<compile_context>
chip_gen: v6e
topology: v6e:2x2x1
jax: 0.10.0
libtpu: 0.0.40
codegen_flags: <defaults>
</compile_context>

<pallas_src>
import jax
import jax.numpy as jnp
from jax.experimental import pallas as pl
from jax.experimental.pallas import tpu as pltpu

_SUBLANE = 8  # f32 sublane count


def _round_up(x, m):
    return ((x + m - 1) // m) * m


def _make_mlp_kernel(n_layers):
    """Fused MLP kernel: (Linear -> ReLU)*(n_layers-1) -> Linear, all in VMEM."""

    def kernel(*refs):
        x_ref = refs[0]
        out_ref = refs[-1]
        param_refs = refs[1:-1]  # alternating W, b (f32, natural shapes)

        h = x_ref[...]                                   # (TB, in_dim) f32
        for i in range(n_layers):
            w = param_refs[2 * i][...]                   # (in_d, out_d)
            b = param_refs[2 * i + 1][...]               # (1, out_d)
            h = jnp.dot(h, w, preferred_element_type=jnp.float32) + b
            if i < n_layers - 1:
                h = jnp.maximum(h, 0.0)                  # ReLU (default activation_fn)
        out_ref[...] = h.astype(out_ref.dtype)

    return kernel


def prepare_softmax_net_params(weights, biases):
    """One-time parameter preparation (hoisted out of the forward call path).

    Casts to f32 and reshapes biases to (1, out) rows for lane broadcast.
    No padding is needed: all feature dims are used at their natural width.
    """
    pw = [jnp.asarray(w, jnp.float32) for w in weights]
    pb = [jnp.asarray(b, jnp.float32).reshape(1, -1) for b in biases]
    return pw, pb


def _choose_tb(batch, block_rows):
    """Rows per grid step: sublane-aligned, capped, and sized so the grid has
    >=2 steps when the batch allows (v7x megacore sharding of the 'parallel'
    batch axis)."""
    half = _round_up(pl.cdiv(batch, 2), _SUBLANE)
    return max(_SUBLANE, min(block_rows, half))


def softmax_net_forward(x, weights, biases, *, block_rows=1024):
    """Run the SoftmaxNet chain on x.

    x:        (B, input_dim) float32
    weights:  list of (in, out) float32 arrays  (transposed vs torch nn.Linear)
    biases:   list of (1, out) float32 arrays   (from prepare_softmax_net_params)
    Returns:  (B, n_classes) float32
    """
    n_layers = len(weights)
    assert n_layers == len(biases) and n_layers >= 1

    B, input_dim = x.shape
    n_classes = weights[-1].shape[1]

    tb = _choose_tb(B, block_rows)
    grid = (pl.cdiv(B, tb),)

    operands = [x]
    for w, b in zip(weights, biases):
        operands.append(w)
        operands.append(b)

    # x / out: tiled along the batch grid axis (auto double-buffered pipeline).
    # weights / biases: constant-index full blocks -> effectively VMEM-resident.
    in_specs = [pl.BlockSpec((tb, input_dim), lambda i: (i, 0))]
    for w, b in zip(weights, biases):
        in_specs.append(pl.BlockSpec(w.shape, lambda i: (0, 0)))
        in_specs.append(pl.BlockSpec(b.shape, lambda i: (0, 0)))
    out_spec = pl.BlockSpec((tb, n_classes), lambda i: (i, 0))

    kernel = _make_mlp_kernel(n_layers)

    flops = 2 * B * sum(int(w.shape[0]) * int(w.shape[1]) for w in weights)
    param_bytes = sum(int(w.size) for w in weights) * 4 + sum(int(b.size) for b in biases) * 4
    bytes_accessed = B * input_dim * 4 + B * n_classes * 4 + param_bytes

    out = pl.pallas_call(
        kernel,
        out_shape=jax.ShapeDtypeStruct((B, n_classes), jnp.float32),
        grid=grid,
        in_specs=in_specs,
        out_specs=out_spec,
        compiler_params=pltpu.CompilerParams(
            dimension_semantics=("parallel",),  # megacore split on v7x; no-op on v5e/v6e
        ),
        cost_estimate=pl.CostEstimate(
            flops=flops, transcendentals=0, bytes_accessed=bytes_accessed
        ),
    )(*operands)

    return out


def init_softmax_net_params(key, input_dim=15, n_classes=2, hidden=(32,)):
    """Deterministic synthetic init matching nn.Linear shapes.

    Mimics PyTorch's default uniform(-1/sqrt(fan_in), 1/sqrt(fan_in)) init.
    Returns weights in (in, out) layout (transpose of torch's (out, in)).
    """
    dims = [input_dim] + list(hidden) + [n_classes]
    weights, biases = [], []
    for i in range(len(dims) - 1):
        fan_in, fan_out = dims[i], dims[i + 1]
        key, kw, kb = jax.random.split(key, 3)
        bound = 1.0 / jnp.sqrt(jnp.float32(fan_in))
        w = jax.random.uniform(kw, (fan_in, fan_out), jnp.float32, -bound, bound)
        b = jax.random.uniform(kb, (fan_out,), jnp.float32, -bound, bound)
        weights.append(w)
        biases.append(b)
    return weights, biases


def _reference_forward(x, weights, biases):
    h = x
    for i, (w, b) in enumerate(zip(weights, biases)):
        h = h @ w + b.reshape(1, -1)
        if i < len(weights) - 1:
            h = jnp.maximum(h, 0.0)
    return h


if __name__ == "__main__":
    # Shapes consistent with the module: input_dim=15, hidden=(32,), n_classes=2.
    INPUT_DIM, HIDDEN, N_CLASSES = 15, (32,), 2

    key = jax.random.PRNGKey(0)
    key, kx1, kx2 = jax.random.split(key, 3)
    weights, biases = init_softmax_net_params(
        key, input_dim=INPUT_DIM, n_classes=N_CLASSES, hidden=HIDDEN
    )
    # One-time parameter preparation (hoisted out of the per-call path).
    pw, pb = prepare_softmax_net_params(weights, biases)

    # 1) Small batch (single grid step, full block).
    B1 = 8
    x1 = jax.random.normal(kx1, (B1, INPUT_DIM), jnp.float32)
    out1 = jax.block_until_ready(softmax_net_forward(x1, pw, pb))
    ref1 = _reference_forward(x1, weights, biases)
    assert out1.shape == (B1, N_CLASSES)
    assert jnp.allclose(out1, ref1, atol=1e-5, rtol=1e-5), "mismatch vs reference (B=8)"

    # 2) Larger, non-multiple batch (exercises the cdiv grid + ragged last block).
    B2 = 1000
    x2 = jax.random.normal(kx2, (B2, INPUT_DIM), jnp.float32)
    out2 = jax.block_until_ready(softmax_net_forward(x2, pw, pb, block_rows=1024))
    ref2 = _reference_forward(x2, weights, biases)
    assert out2.shape == (B2, N_CLASSES)
    assert jnp.allclose(out2, ref2, atol=1e-5, rtol=1e-5), "mismatch vs reference (B=1000)"

    print("KERNEL_OK")
</pallas_src>

<mosaic_0001>
module attributes {stable_mosaic.version = 11 : i64} {
  func.func @kernel(%arg0: i32, %arg1: memref<8x15xf32, #tpu.memory_space<vmem>>, %arg2: memref<15x32xf32, #tpu.memory_space<vmem>>, %arg3: memref<1x32xf32, #tpu.memory_space<vmem>>, %arg4: memref<32x2xf32, #tpu.memory_space<vmem>>, %arg5: memref<1x2xf32, #tpu.memory_space<vmem>>, %arg6: memref<8x2xf32, #tpu.memory_space<vmem>>) attributes {dimension_semantics = [#tpu.dimension_semantics<parallel>], iteration_bounds = array<i64: 1>, scalar_prefetch = 0 : i64, scratch_operands = 0 : i64, tpu.core_type = #tpu.core_type<tc>, window_params = [{transform_indices = @transform_0, window_bounds = array<i64: 8, 15>}, {pipeline_mode = #tpu.pipeline_mode<synchronous>, transform_indices = @transform_1, window_bounds = array<i64: 15, 32>}, {pipeline_mode = #tpu.pipeline_mode<synchronous>, transform_indices = @transform_2, window_bounds = array<i64: 1, 32>}, {pipeline_mode = #tpu.pipeline_mode<synchronous>, transform_indices = @transform_3, window_bounds = array<i64: 32, 2>}, {pipeline_mode = #tpu.pipeline_mode<synchronous>, transform_indices = @transform_4, window_bounds = array<i64: 1, 2>}, {transform_indices = @transform_5, window_bounds = array<i64: 8, 2>}]} {
    %c0 = arith.constant 0 : index
    %c0_0 = arith.constant 0 : index
    %0 = vector.load %arg1[%c0, %c0_0] : memref<8x15xf32, #tpu.memory_space<vmem>>, vector<8x15xf32>
    %c0_1 = arith.constant 0 : index
    %c0_2 = arith.constant 0 : index
    %1 = vector.load %arg2[%c0_1, %c0_2] : memref<15x32xf32, #tpu.memory_space<vmem>>, vector<15x32xf32>
    %c0_3 = arith.constant 0 : index
    %c0_4 = arith.constant 0 : index
    %2 = vector.load %arg3[%c0_3, %c0_4] : memref<1x32xf32, #tpu.memory_space<vmem>>, vector<1x32xf32>
    %cst = arith.constant dense<0.000000e+00> : vector<8x32xf32>
    %3 = tpu.matmul %0, %1, %cst {dimension_numbers = #tpu.dot_dimension_numbers<[1], [0], [0], [1], [0, 0, 1, 1], [], []>} : vector<8x15xf32>, vector<15x32xf32>, vector<8x32xf32> -> vector<8x32xf32>
    %4 = vector.broadcast %2 : vector<1x32xf32> to vector<8x32xf32>
    %5 = arith.addf %3, %4 : vector<8x32xf32>
    %cst_5 = arith.constant 0.000000e+00 : f32
    %6 = vector.broadcast %cst_5 : f32 to vector<8x32xf32>
    %7 = arith.maximumf %5, %6 : vector<8x32xf32>
    %c0_6 = arith.constant 0 : index
    %c0_7 = arith.constant 0 : index
    %8 = vector.load %arg4[%c0_6, %c0_7] : memref<32x2xf32, #tpu.memory_space<vmem>>, vector<32x2xf32>
    %c0_8 = arith.constant 0 : index
    %c0_9 = arith.constant 0 : index
    %9 = vector.load %arg5[%c0_8, %c0_9] : memref<1x2xf32, #tpu.memory_space<vmem>>, vector<1x2xf32>
    %cst_10 = arith.constant dense<0.000000e+00> : vector<8x2xf32>
    %10 = tpu.matmul %7, %8, %cst_10 {dimension_numbers = #tpu.dot_dimension_numbers<[1], [0], [0], [1], [0, 0, 1, 1], [], []>} : vector<8x32xf32>, vector<32x2xf32>, vector<8x2xf32> -> vector<8x2xf32>
    %11 = vector.broadcast %9 : vector<1x2xf32> to vector<8x2xf32>
    %12 = arith.addf %10, %11 : vector<8x2xf32>
    %c0_11 = arith.constant 0 : index
    %c0_12 = arith.constant 0 : index
    %13 = vector.load %arg6[%c0_11, %c0_12] : memref<8x2xf32, #tpu.memory_space<vmem>>, vector<8x2xf32>
    tpu.vector_store %arg6[%c0_11, %c0_12], %12 {strides = array<i32>} : memref<8x2xf32, #tpu.memory_space<vmem>>, vector<8x2xf32>,
    return
  }
  func.func @transform_0(%arg0: i32) -> (i32, i32) {
    %c0_i32 = arith.constant 0 : i32
    %c0_i32_0 = arith.constant 0 : i32
    return %arg0, %c0_i32 : i32, i32
  }
  func.func @transform_1(%arg0: i32) -> (i32, i32) {
    %c0_i32 = arith.constant 0 : i32
    %c0_i32_0 = arith.constant 0 : i32
    %c0_i32_1 = arith.constant 0 : i32
    return %c0_i32, %c0_i32_0 : i32, i32
  }
  func.func @transform_2(%arg0: i32) -> (i32, i32) {
    %c0_i32 = arith.constant 0 : i32
    %c0_i32_0 = arith.constant 0 : i32
    %c0_i32_1 = arith.constant 0 : i32
    return %c0_i32, %c0_i32_0 : i32, i32
  }
  func.func @transform_3(%arg0: i32) -> (i32, i32) {
    %c0_i32 = arith.constant 0 : i32
    %c0_i32_0 = arith.constant 0 : i32
    %c0_i32_1 = arith.constant 0 : i32
    return %c0_i32, %c0_i32_0 : i32, i32
  }
  func.func @transform_4(%arg0: i32) -> (i32, i32) {
    %c0_i32 = arith.constant 0 : i32
    %c0_i32_0 = arith.constant 0 : i32
    %c0_i32_1 = arith.constant 0 : i32
    return %c0_i32, %c0_i32_0 : i32, i32
  }
  func.func @transform_5(%arg0: i32) -> (i32, i32) {
    %c0_i32 = arith.constant 0 : i32
    %c0_i32_0 = arith.constant 0 : i32
    return %arg0, %c0_i32 : i32, i32
  }
}

</mosaic_0001>

<bundles_post_ra>
// kernel: tpu_custom_call.1
= control target key start
LH: loop header
LB: loop body
LE: loop exit
PB: predicated region body
PF: predicated region fallthrough
CT: control target
= control target key end

     0   :  { %vm34_vm0 = vcmask 1046528   ;;  %v233_v0 = vmov 0.0   ;;  %vm234_vm1 = vmmov 0   ;;  %vm30_vm2 = vcmask 121856   ;;  %s295_s1 = inlined_call_operand.vmem [shape: f32[15,32], index: 1, kind: input, shape index: {}]   ;;  %s296_s0 = inlined_call_operand.vmem [shape: f32[8,15], index: 0, kind: input, shape index: {}]   ;;  %s297_s3 = inlined_call_operand.vmem [shape: f32[32,2], index: 3, kind: input, shape index: {}]   ;;  %s298_s2 = inlined_call_operand.vmem [shape: f32[1,32], index: 2, kind: input, shape index: {}]   ;;  %s299_s4 = inlined_call_operand.vmem [shape: f32[1,2], index: 4, kind: input, shape index: {}]   ;;  %s300_s5 = inlined_call_operand.vmem [shape: f32[8,2], index: 5, kind: output, shape index: {}]  }
   0x1   :  { %213 = vmatprep.subr.mxu0 %v233_v0  ;;  %v22_v1 = vld [vmem:[%s295_s1 + $0x8] sm:$0x7f]  ;;  %v21_v2 = vld [vmem:[%s295_s1] sm:$0xff]  ;;  %217 = vmatprep.mubr.msk.f32.mxu0 %vm234_vm1, %v233_v0  ;;  %v112_v4 = vld [vmem:[%s297_s3 + $0x18] sm:$0xff]  ;;  %vm120_vm3 = vcmask 261120   ;;  %vm194_vm4 = vcmask 15360  }
   0x2   :  { %214 = vmatpush3.msk.msra.mxu0 %vm34_vm0, %v22_v1  ;;  %v20_v3 = vld [vmem:[%s296_s0] sm:$0xff]  ;;  %220 = vmatprep.subr.mxu1 %v233_v0  ;;  %v111_v5 = vld [vmem:[%s297_s3 + $0x10] sm:$0xff]  ;;  %v110_v6 = vld [vmem:[%s297_s3 + $0x8] sm:$0xff] }
   0x3   :  { %215 = vmatprep.subr.mxu0 %v233_v0  ;;  %221 = vmatpush3.msra.mxu1 %v112_v4  ;;  %v109_v7 = vld [vmem:[%s297_s3] sm:$0xff] }
   0x4   :  { %216 = vmatpush3.msra.mxu0 %v21_v2  ;;  %222 = vmatprep.subr.mxu1 %v233_v0  ;;  %v200_v8 = vld [vmem:[%s298_s2] ss:$0 sm:$0xff] }
   0x5   :  { %218 = vmatmul.mubr.msk.f32.vlgmr.msra.gmra.mxu0 %vm30_vm2, %v20_v3  ;;  %228 = vmatprep.mubr.msk.f32.mxu1 %vm234_vm1, %v233_v0  ;;  %v203_v13 = vld [vmem:[%s299_s4] ss:$0 sm:$0xff] }
   0x6   :  { %223 = vmatpush3.msra.mxu1 %v111_v5 }
   0x7   :  { %224 = vmatprep.subr.mxu1 %v233_v0 }
   0x8   :  { %225 = vmatpush3.msra.mxu1 %v110_v6 }
   0x9   :  { %226 = vmatprep.subr.mxu1 %v233_v0 }
   0xa   :  { %227 = vmatpush3.msra.mxu1 %v109_v7 }
  0xc5   :  { %v104_v9 = vpop.f32.mrf.mxu0 }
  0xc6   :  { %v105_v10 = vadd.f32 %v200_v8, %v104_v9 }
  0xc7   :  { %v219_v11 = vpop.f32.mrf.mxu0 }
  0xc8   :  { %v108_v12 = vmax.f32 %v105_v10, 0.0 }
  0xca   :  { %229 = vmatmul.mubr.msk.f32.vlgmr.msra.gmra.mxu1 %vm120_vm3, %v108_v12 }
 0x18a   :  { %v190_v14 = vpop.f32.mrf.mxu1 }
 0x18b   :  { %v191_v15 = vadd.f32 %v203_v13, %v190_v14 }
 0x18c   :  { %v230_v16 = vpop.f32.mrf.mxu1 }
 0x18d   :  { %195 = vst.msk [vmem:[%s300_s5] sm:$0xff] %vm194_vm4, %v191_v15 }

</bundles_post_ra>
